<compile_context>
chip_gen: v6e
topology: v6e:2x2x1
jax: 0.10.0
libtpu: 0.0.40
codegen_flags: <defaults>
</compile_context>

<pallas_src>
import functools
import random

import jax
import jax.numpy as jnp
from jax.experimental import pallas as pl
from jax.experimental.pallas import tpu as pltpu


def _round_up(x, m):
    return ((x + m - 1) // m) * m


def _pad2(a, rows, cols):
    pr, pc = rows - a.shape[0], cols - a.shape[1]
    if pr or pc:
        a = jnp.pad(a, ((0, pr), (0, pc)))
    return a


def _make_kernel(n_mid):
    """Kernel with the mid-layer chain statically unrolled n_mid times."""

    def kernel(x_ref,                 # (TN, D_in_p)
               w_in_ref, b_in_ref,    # (D_in_p, Hp), (1, Hp)
               w_mid_ref, b_mid_ref,  # (Hp, Hp),     (1, Hp)
               w_out_ref, b_out_ref,  # (Hp, D_out_p),(1, D_out_p)
               y_ref):                # (TN, D_out_p)
        # input_lin + clamp(min=0)
        h = jnp.dot(x_ref[...], w_in_ref[...],
                    preferred_element_type=jnp.float32) + b_in_ref[...]
        h = jnp.maximum(h, 0.0)

        # Shared mid_lin + clamp(min=0), statically unrolled (0..3 times).
        if n_mid > 0:
            w_mid = w_mid_ref[...]
            b_mid = b_mid_ref[...]   # loaded once, reused across the unroll
            for _ in range(n_mid):
                h = jnp.dot(h, w_mid,
                            preferred_element_type=jnp.float32) + b_mid
                h = jnp.maximum(h, 0.0)

        # output_lin
        y = jnp.dot(h, w_out_ref[...],
                    preferred_element_type=jnp.float32) + b_out_ref[...]
        y_ref[...] = y.astype(y_ref.dtype)

    return kernel


@functools.lru_cache(maxsize=None)
def _build_forward(n_mid, N, D_in, H, D_out):
    """Builds (and jits) a padded, batch-tiled forward for fixed static config."""
    # Lane-dense padded feature dims (multiples of 128).
    D_in_p = _round_up(D_in, 128)
    Hp = _round_up(H, 128)
    D_out_p = _round_up(D_out, 128)

    # Batch tiling: small batches run as one sublane-aligned tile; large
    # batches are tiled at 256 rows/step over a "parallel" grid axis.
    if N <= 256:
        TN = _round_up(N, 8)
        Np = TN
    else:
        TN = 256
        Np = _round_up(N, TN)
    grid = (Np // TN,)

    kernel = _make_kernel(n_mid)

    call = pl.pallas_call(
        kernel,
        out_shape=jax.ShapeDtypeStruct((Np, D_out_p), jnp.float32),
        grid=grid,
        in_specs=[
            pl.BlockSpec((TN, D_in_p), lambda i: (i, 0)),
            # Weights/biases: constant index maps -> VMEM-resident across grid.
            pl.BlockSpec((D_in_p, Hp), lambda i: (0, 0)),
            pl.BlockSpec((1, Hp), lambda i: (0, 0)),
            pl.BlockSpec((Hp, Hp), lambda i: (0, 0)),
            pl.BlockSpec((1, Hp), lambda i: (0, 0)),
            pl.BlockSpec((Hp, D_out_p), lambda i: (0, 0)),
            pl.BlockSpec((1, D_out_p), lambda i: (0, 0)),
        ],
        out_specs=pl.BlockSpec((TN, D_out_p), lambda i: (i, 0)),
        compiler_params=pltpu.CompilerParams(
            dimension_semantics=("parallel",)),
    )

    def fwd(x, w_in, b_in, w_mid, b_mid, w_out, b_out):
        xp = _pad2(x, Np, D_in_p)
        w_in_p = _pad2(w_in, D_in_p, Hp)
        b_in_p = _pad2(b_in, 1, Hp)
        w_mid_p = _pad2(w_mid, Hp, Hp)
        b_mid_p = _pad2(b_mid, 1, Hp)
        w_out_p = _pad2(w_out, Hp, D_out_p)
        b_out_p = _pad2(b_out, 1, D_out_p)
        yp = call(xp, w_in_p, b_in_p, w_mid_p, b_mid_p, w_out_p, b_out_p)
        return yp[:N, :D_out]

    return jax.jit(fwd)


def dynamicnet_forward(x, params, n_mid):
    """x: (N, D_in) f32. params: pre-transposed weights / 2-D biases.
    n_mid: python int in [0, 3] — number of shared mid-layer applications."""
    N, D_in = x.shape
    H = params["w_in"].shape[1]
    D_out = params["w_out"].shape[1]
    fwd = _build_forward(int(n_mid), N, D_in, H, D_out)
    return fwd(x, params["w_in"], params["b_in"],
               params["w_mid"], params["b_mid"],
               params["w_out"], params["b_out"])


def init_params(key, D_in, H, D_out):
    """PyTorch-Linear-style uniform(-1/sqrt(fan_in), 1/sqrt(fan_in)) init,
    deterministic. Weights stored as (in_features, out_features)."""
    def linear(k, fan_in, fan_out):
        kw, kb = jax.random.split(k)
        bound = 1.0 / jnp.sqrt(jnp.float32(fan_in))
        w = jax.random.uniform(kw, (fan_in, fan_out), jnp.float32, -bound, bound)
        b = jax.random.uniform(kb, (1, fan_out), jnp.float32, -bound, bound)
        return w, b

    k1, k2, k3 = jax.random.split(key, 3)
    w_in, b_in = linear(k1, D_in, H)
    w_mid, b_mid = linear(k2, H, H)
    w_out, b_out = linear(k3, H, D_out)
    return dict(w_in=w_in, b_in=b_in,
                w_mid=w_mid, b_mid=b_mid,
                w_out=w_out, b_out=b_out)


def reference_forward(x, params, n_mid):
    h = jnp.maximum(x @ params["w_in"] + params["b_in"], 0.0)
    for _ in range(n_mid):
        h = jnp.maximum(h @ params["w_mid"] + params["b_mid"], 0.0)
    return h @ params["w_out"] + params["b_out"]


if __name__ == "__main__":
    N, D_in, H, D_out = 8, 16, 32, 8

    key = jax.random.PRNGKey(0)
    kx, kp = jax.random.split(key)
    x = jax.random.normal(kx, (N, D_in), dtype=jnp.float32)
    params = init_params(kp, D_in, H, D_out)

    # Reproduce DynamicNet's host-side randomness deterministically.
    random.seed(0)
    n_mid = random.randint(0, 3)

    y = dynamicnet_forward(x, params, n_mid)
    y = jax.block_until_ready(y)

    y_ref = reference_forward(x, params, n_mid)
    assert y.shape == (N, D_out)
    assert jnp.allclose(y, y_ref, atol=1e-5, rtol=1e-5)

    # Sanity-check every possible mid-layer count compiles & matches.
    for nm in range(4):
        yi = jax.block_until_ready(dynamicnet_forward(x, params, nm))
        assert jnp.allclose(yi, reference_forward(x, params, nm),
                            atol=1e-5, rtol=1e-5)

    print("KERNEL_OK")
</pallas_src>

<mosaic_0001>
module attributes {stable_mosaic.version = 11 : i64} {
  func.func @kernel(%arg0: i32, %arg1: memref<8x128xf32, #tpu.memory_space<vmem>>, %arg2: memref<128x128xf32, #tpu.memory_space<vmem>>, %arg3: memref<1x128xf32, #tpu.memory_space<vmem>>, %arg4: memref<128x128xf32, #tpu.memory_space<vmem>>, %arg5: memref<1x128xf32, #tpu.memory_space<vmem>>, %arg6: memref<128x128xf32, #tpu.memory_space<vmem>>, %arg7: memref<1x128xf32, #tpu.memory_space<vmem>>, %arg8: memref<8x128xf32, #tpu.memory_space<vmem>>) attributes {dimension_semantics = [#tpu.dimension_semantics<parallel>], iteration_bounds = array<i64: 1>, scalar_prefetch = 0 : i64, scratch_operands = 0 : i64, tpu.core_type = #tpu.core_type<tc>, window_params = [{transform_indices = @transform_0, window_bounds = array<i64: 8, 128>}, {pipeline_mode = #tpu.pipeline_mode<synchronous>, transform_indices = @transform_1, window_bounds = array<i64: 128, 128>}, {pipeline_mode = #tpu.pipeline_mode<synchronous>, transform_indices = @transform_2, window_bounds = array<i64: 1, 128>}, {pipeline_mode = #tpu.pipeline_mode<synchronous>, transform_indices = @transform_3, window_bounds = array<i64: 128, 128>}, {pipeline_mode = #tpu.pipeline_mode<synchronous>, transform_indices = @transform_4, window_bounds = array<i64: 1, 128>}, {pipeline_mode = #tpu.pipeline_mode<synchronous>, transform_indices = @transform_5, window_bounds = array<i64: 128, 128>}, {pipeline_mode = #tpu.pipeline_mode<synchronous>, transform_indices = @transform_6, window_bounds = array<i64: 1, 128>}, {transform_indices = @transform_7, window_bounds = array<i64: 8, 128>}]} {
    %c0 = arith.constant 0 : index
    %c0_0 = arith.constant 0 : index
    %0 = vector.load %arg1[%c0, %c0_0] : memref<8x128xf32, #tpu.memory_space<vmem>>, vector<8x128xf32>
    %c0_1 = arith.constant 0 : index
    %c0_2 = arith.constant 0 : index
    %1 = vector.load %arg2[%c0_1, %c0_2] : memref<128x128xf32, #tpu.memory_space<vmem>>, vector<128x128xf32>
    %cst = arith.constant dense<0.000000e+00> : vector<8x128xf32>
    %2 = tpu.matmul %0, %1, %cst {dimension_numbers = #tpu.dot_dimension_numbers<[1], [0], [0], [1], [0, 0, 1, 1], [], []>} : vector<8x128xf32>, vector<128x128xf32>, vector<8x128xf32> -> vector<8x128xf32>
    %c0_3 = arith.constant 0 : index
    %c0_4 = arith.constant 0 : index
    %3 = vector.load %arg3[%c0_3, %c0_4] : memref<1x128xf32, #tpu.memory_space<vmem>>, vector<1x128xf32>
    %4 = vector.broadcast %3 : vector<1x128xf32> to vector<8x128xf32>
    %5 = arith.addf %2, %4 : vector<8x128xf32>
    %cst_5 = arith.constant 0.000000e+00 : f32
    %6 = vector.broadcast %cst_5 : f32 to vector<8x128xf32>
    %7 = arith.maximumf %5, %6 : vector<8x128xf32>
    %c0_6 = arith.constant 0 : index
    %c0_7 = arith.constant 0 : index
    %8 = vector.load %arg4[%c0_6, %c0_7] : memref<128x128xf32, #tpu.memory_space<vmem>>, vector<128x128xf32>
    %c0_8 = arith.constant 0 : index
    %c0_9 = arith.constant 0 : index
    %9 = vector.load %arg5[%c0_8, %c0_9] : memref<1x128xf32, #tpu.memory_space<vmem>>, vector<1x128xf32>
    %cst_10 = arith.constant dense<0.000000e+00> : vector<8x128xf32>
    %10 = tpu.matmul %7, %8, %cst_10 {dimension_numbers = #tpu.dot_dimension_numbers<[1], [0], [0], [1], [0, 0, 1, 1], [], []>} : vector<8x128xf32>, vector<128x128xf32>, vector<8x128xf32> -> vector<8x128xf32>
    %11 = vector.broadcast %9 : vector<1x128xf32> to vector<8x128xf32>
    %12 = arith.addf %10, %11 : vector<8x128xf32>
    %cst_11 = arith.constant 0.000000e+00 : f32
    %13 = vector.broadcast %cst_11 : f32 to vector<8x128xf32>
    %14 = arith.maximumf %12, %13 : vector<8x128xf32>
    %cst_12 = arith.constant dense<0.000000e+00> : vector<8x128xf32>
    %15 = tpu.matmul %14, %8, %cst_12 {dimension_numbers = #tpu.dot_dimension_numbers<[1], [0], [0], [1], [0, 0, 1, 1], [], []>} : vector<8x128xf32>, vector<128x128xf32>, vector<8x128xf32> -> vector<8x128xf32>
    %16 = vector.broadcast %9 : vector<1x128xf32> to vector<8x128xf32>
    %17 = arith.addf %15, %16 : vector<8x128xf32>
    %cst_13 = arith.constant 0.000000e+00 : f32
    %18 = vector.broadcast %cst_13 : f32 to vector<8x128xf32>
    %19 = arith.maximumf %17, %18 : vector<8x128xf32>
    %cst_14 = arith.constant dense<0.000000e+00> : vector<8x128xf32>
    %20 = tpu.matmul %19, %8, %cst_14 {dimension_numbers = #tpu.dot_dimension_numbers<[1], [0], [0], [1], [0, 0, 1, 1], [], []>} : vector<8x128xf32>, vector<128x128xf32>, vector<8x128xf32> -> vector<8x128xf32>
    %21 = vector.broadcast %9 : vector<1x128xf32> to vector<8x128xf32>
    %22 = arith.addf %20, %21 : vector<8x128xf32>
    %cst_15 = arith.constant 0.000000e+00 : f32
    %23 = vector.broadcast %cst_15 : f32 to vector<8x128xf32>
    %24 = arith.maximumf %22, %23 : vector<8x128xf32>
    %c0_16 = arith.constant 0 : index
    %c0_17 = arith.constant 0 : index
    %25 = vector.load %arg6[%c0_16, %c0_17] : memref<128x128xf32, #tpu.memory_space<vmem>>, vector<128x128xf32>
    %cst_18 = arith.constant dense<0.000000e+00> : vector<8x128xf32>
    %26 = tpu.matmul %24, %25, %cst_18 {dimension_numbers = #tpu.dot_dimension_numbers<[1], [0], [0], [1], [0, 0, 1, 1], [], []>} : vector<8x128xf32>, vector<128x128xf32>, vector<8x128xf32> -> vector<8x128xf32>
    %c0_19 = arith.constant 0 : index
    %c0_20 = arith.constant 0 : index
    %27 = vector.load %arg7[%c0_19, %c0_20] : memref<1x128xf32, #tpu.memory_space<vmem>>, vector<1x128xf32>
    %28 = vector.broadcast %27 : vector<1x128xf32> to vector<8x128xf32>
    %29 = arith.addf %26, %28 : vector<8x128xf32>
    %c0_21 = arith.constant 0 : index
    %c0_22 = arith.constant 0 : index
    %30 = vector.load %arg8[%c0_21, %c0_22] : memref<8x128xf32, #tpu.memory_space<vmem>>, vector<8x128xf32>
    tpu.vector_store %arg8[%c0_21, %c0_22], %29 {strides = array<i32>} : memref<8x128xf32, #tpu.memory_space<vmem>>, vector<8x128xf32>,
    return
  }
  func.func @transform_0(%arg0: i32) -> (i32, i32) {
    %c0_i32 = arith.constant 0 : i32
    %c0_i32_0 = arith.constant 0 : i32
    return %arg0, %c0_i32 : i32, i32
  }
  func.func @transform_1(%arg0: i32) -> (i32, i32) {
    %c0_i32 = arith.constant 0 : i32
    %c0_i32_0 = arith.constant 0 : i32
    %c0_i32_1 = arith.constant 0 : i32
    return %c0_i32, %c0_i32_0 : i32, i32
  }
  func.func @transform_2(%arg0: i32) -> (i32, i32) {
    %c0_i32 = arith.constant 0 : i32
    %c0_i32_0 = arith.constant 0 : i32
    %c0_i32_1 = arith.constant 0 : i32
    return %c0_i32, %c0_i32_0 : i32, i32
  }
  func.func @transform_3(%arg0: i32) -> (i32, i32) {
    %c0_i32 = arith.constant 0 : i32
    %c0_i32_0 = arith.constant 0 : i32
    %c0_i32_1 = arith.constant 0 : i32
    return %c0_i32, %c0_i32_0 : i32, i32
  }
  func.func @transform_4(%arg0: i32) -> (i32, i32) {
    %c0_i32 = arith.constant 0 : i32
    %c0_i32_0 = arith.constant 0 : i32
    %c0_i32_1 = arith.constant 0 : i32
    return %c0_i32, %c0_i32_0 : i32, i32
  }
  func.func @transform_5(%arg0: i32) -> (i32, i32) {
    %c0_i32 = arith.constant 0 : i32
    %c0_i32_0 = arith.constant 0 : i32
    %c0_i32_1 = arith.constant 0 : i32
    return %c0_i32, %c0_i32_0 : i32, i32
  }
  func.func @transform_6(%arg0: i32) -> (i32, i32) {
    %c0_i32 = arith.constant 0 : i32
    %c0_i32_0 = arith.constant 0 : i32
    %c0_i32_1 = arith.constant 0 : i32
    return %c0_i32, %c0_i32_0 : i32, i32
  }
  func.func @transform_7(%arg0: i32) -> (i32, i32) {
    %c0_i32 = arith.constant 0 : i32
    %c0_i32_0 = arith.constant 0 : i32
    return %arg0, %c0_i32 : i32, i32
  }
}

</mosaic_0001>

<bundles_post_ra>
// kernel: fwd.1
= control target key start
LH: loop header
LB: loop body
LE: loop exit
PB: predicated region body
PF: predicated region fallthrough
CT: control target
= control target key end

     0   :  { %v754_v1 = vmov 0.0   ;;  %vm755_vm0 = vmmov 0   ;;  %s1111_s0 = inlined_call_operand.vmem [shape: f32[8,128], index: 0, kind: input, shape index: {}]   ;;  %s1112_s1 = inlined_call_operand.vmem [shape: f32[128,128], index: 1, kind: input, shape index: {}]   ;;  %s1113_s2 = inlined_call_operand.vmem [shape: f32[1,128], index: 2, kind: input, shape index: {}]   ;;  %s1114_s3 = inlined_call_operand.vmem [shape: f32[128,128], index: 3, kind: input, shape index: {}]   ;;  %s1115_s4 = inlined_call_operand.vmem [shape: f32[1,128], index: 4, kind: input, shape index: {}]   ;;  %s1116_s5 = inlined_call_operand.vmem [shape: f32[128,128], index: 5, kind: input, shape index: {}]   ;;  %s1117_s6 = inlined_call_operand.vmem [shape: f32[1,128], index: 6, kind: input, shape index: {}]   ;;  %s1118_s7 = inlined_call_operand.hbm [shape: f32[8,128], index: 7, kind: output, shape index: {}]  }
   0x1   :  { %v43_v0 = vld [vmem:[%s1112_s1 + $0x78] sm:$0xff]  ;;  %554 = vmatprep.subr.mxu0 %v754_v1  ;;  %v42_v2 = vld [vmem:[%s1112_s1 + $0x70] sm:$0xff]  ;;  %586 = vmatprep.mubr.msk.f32.mxu0 %vm755_vm0, %v754_v1  ;;  %v41_v3 = vld [vmem:[%s1112_s1 + $0x68] sm:$0xff] }
   0x2   :  { %555 = vmatpush3.msra.mxu0 %v43_v0  ;;  %589 = vmatprep.subr.mxu1 %v754_v1  ;;  %v40_v4 = vld [vmem:[%s1112_s1 + $0x60] sm:$0xff]  ;;  %v820_v5 = vld [vmem:[%s1114_s3 + $0x78] sm:$0xff]  ;;  %v826_v6 = vld [vmem:[%s1114_s3 + $0x70] sm:$0xff] }
   0x3   :  { %556 = vmatprep.subr.mxu0 %v754_v1  ;;  %621 = vmatprep.mubr.msk.f32.mxu1 %vm755_vm0, %v754_v1  ;;  %v39_v7 = vld [vmem:[%s1112_s1 + $0x58] sm:$0xff]  ;;  %v836_v8 = vld [vmem:[%s1114_s3 + $0x68] sm:$0xff]  ;;  %v38_v9 = vld [vmem:[%s1112_s1 + $0x50] sm:$0xff] }
   0x4   :  { %557 = vmatpush3.msra.mxu0 %v42_v2  ;;  %590 = vmatpush3.msra.mxu1 %v820_v5  ;;  %v847_v10 = vld [vmem:[%s1114_s3 + $0x60] sm:$0xff] }
   0x5   :  { %558 = vmatprep.subr.mxu0 %v754_v1  ;;  %591 = vmatprep.subr.mxu1 %v754_v1 }
   0x6   :  { %559 = vmatpush3.msra.mxu0 %v41_v3  ;;  %592 = vmatpush3.msra.mxu1 %v826_v6 }
   0x7   :  { %560 = vmatprep.subr.mxu0 %v754_v1  ;;  %593 = vmatprep.subr.mxu1 %v754_v1 }
   0x8   :  { %561 = vmatpush3.msra.mxu0 %v40_v4  ;;  %594 = vmatpush3.msra.mxu1 %v836_v8 }
   0x9   :  { %562 = vmatprep.subr.mxu0 %v754_v1 }
   0xa   :  { %563 = vmatpush3.msra.mxu0 %v39_v7 }
   0xb   :  { %12 = vsyncpa [#allocation3], 0  ;;  %564 = vmatprep.subr.mxu0 %v754_v1  ;;  %v37_v11 = vld [vmem:[%s1112_s1 + $0x48] sm:$0xff]  ;;  %595 = vmatprep.subr.mxu1 %v754_v1  ;;  %v858_v12 = vld [vmem:[%s1114_s3 + $0x58] sm:$0xff]  ;;  %s756_s26 = smov [#allocation2]  }
   0xc   :  { %565 = vmatpush3.msra.mxu0 %v38_v9  ;;  %596 = vmatpush3.msra.mxu1 %v847_v10  ;;  %v36_v13 = vld [vmem:[%s1112_s1 + $0x40] sm:$0xff]  ;;  %v869_v14 = vld [vmem:[%s1114_s3 + $0x50] sm:$0xff]  ;;  %v35_v15 = vld [vmem:[%s1112_s1 + $0x38] sm:$0xff]  ;;  %s458_s27 = sshll.u32 %s756_s26, 4  ;;  %s459_s27 = int_to_ptr.vmem [resolvable:$true] %s458_s27 }
   0xd   :  { %566 = vmatprep.subr.mxu0 %v754_v1  ;;  %597 = vmatprep.subr.mxu1 %v754_v1  ;;  %v880_v16 = vld [vmem:[%s1114_s3 + $0x48] sm:$0xff]  ;;  %v34_v17 = vld [vmem:[%s1112_s1 + $0x30] sm:$0xff]  ;;  %v891_v18 = vld [vmem:[%s1114_s3 + $0x40] sm:$0xff]  ;;  %s732_s28 = scalar_lea.vmem %s459_s27, 128  ;;  %p737_p1 = scmp.lt.s32.totalorder %s459_s27, %s459_s27 }
   0xe   :  { %567 = vmatpush3.msra.mxu0 %v37_v11  ;;  %598 = vmatpush3.msra.mxu1 %v858_v12  ;;  %v33_v19 = vld [vmem:[%s1112_s1 + $0x28] sm:$0xff]  ;;  %v902_v20 = vld [vmem:[%s1114_s3 + $0x38] sm:$0xff]  ;;  %v32_v21 = vld [vmem:[%s1112_s1 + $0x20] sm:$0xff]  ;;  %p733_p0 = scmp.ne.s32.totalorder %s459_s27, %s732_s28  ;;  %p738_p2 = scmp.lt.s32.totalorder %s732_s28, %s732_s28 }
   0xf   :  { %568 = vmatprep.subr.mxu0 %v754_v1  ;;  %599 = vmatprep.subr.mxu1 %v754_v1  ;;  %v913_v22 = vld [vmem:[%s1114_s3 + $0x30] sm:$0xff]  ;;  %v31_v23 = vld [vmem:[%s1112_s1 + $0x18] sm:$0xff]  ;;  %v924_v24 = vld [vmem:[%s1114_s3 + $0x28] sm:$0xff] }
  0x10   :  { %569 = vmatpush3.msra.mxu0 %v36_v13  ;;  %600 = vmatpush3.msra.mxu1 %v869_v14  ;;  %v30_v25 = vld [vmem:[%s1112_s1 + $0x10] sm:$0xff]  ;;  %v935_v26 = vld [vmem:[%s1114_s3 + $0x20] sm:$0xff]  ;;  %v29_v27 = vld [vmem:[%s1112_s1 + $0x8] sm:$0xff]  ;;  %p739_p3 = por %p738_p2, %p737_p1 }
  0x11   :  { %570 = vmatprep.subr.mxu0 %v754_v1  ;;  %601 = vmatprep.subr.mxu1 %v754_v1  ;;  %v946_v28 = vld [vmem:[%s1114_s3 + $0x18] sm:$0xff]  ;;  %v28_v29 = vld [vmem:[%s1112_s1] sm:$0xff]  ;;  %v124_v31 = vld [vmem:[%s1114_s3 + $0x10] sm:$0xff] }
  0x12   :  { %571 = vmatpush3.msra.mxu0 %v35_v15  ;;  %602 = vmatpush3.msra.mxu1 %v880_v16  ;;  %v27_v30 = vld [vmem:[%s1111_s0] sm:$0xff]  ;;  %v123_v32 = vld [vmem:[%s1114_s3 + $0x8] sm:$0xff]  ;;  %v373_v44 = vld [vmem:[%s1116_s5 + $0x78] sm:$0xff]  ;;  %p740_p4 = pnand %p739_p3, %p733_p0 }
  0x13   :  { %572 = vmatprep.subr.mxu0 %v754_v1  ;;  %603 = vmatprep.subr.mxu1 %v754_v1  ;;  %v122_v33 = vld [vmem:[%s1114_s3] sm:$0xff]  ;;  %v372_v45 = vld [vmem:[%s1116_s5 + $0x70] sm:$0xff]  ;;  %v371_v46 = vld [vmem:[%s1116_s5 + $0x68] sm:$0xff] }
  0x14   :  { %573 = vmatpush3.msra.mxu0 %v34_v17  ;;  %604 = vmatpush3.msra.mxu1 %v891_v18  ;;  %v466_v34 = vld [vmem:[%s1113_s2] ss:$0 sm:$0xff]  ;;  %v369_v48 = vld [vmem:[%s1116_s5 + $0x58] sm:$0xff]  ;;  %v368_v49 = vld [vmem:[%s1116_s5 + $0x50] sm:$0xff] }
  0x15   :  { %574 = vmatprep.subr.mxu0 %v754_v1  ;;  %605 = vmatprep.subr.mxu1 %v754_v1  ;;  %v467_v39 = vld [vmem:[%s1115_s4] ss:$0 sm:$0xff]  ;;  %v367_v50 = vld [vmem:[%s1116_s5 + $0x48] sm:$0xff]  ;;  %v365_v52 = vld [vmem:[%s1116_s5 + $0x38] sm:$0xff] }
  0x16   :  { %575 = vmatpush3.msra.mxu0 %v33_v19  ;;  %606 = vmatpush3.msra.mxu1 %v902_v20  ;;  %v370_v47 = vld [vmem:[%s1116_s5 + $0x60] sm:$0xff]  ;;  %v364_v53 = vld [vmem:[%s1116_s5 + $0x30] sm:$0xff]  ;;  %v363_v54 = vld [vmem:[%s1116_s5 + $0x28] sm:$0xff] }
  0x17   :  { %576 = vmatprep.subr.mxu0 %v754_v1  ;;  %607 = vmatprep.subr.mxu1 %v754_v1  ;;  %v366_v51 = vld [vmem:[%s1116_s5 + $0x40] sm:$0xff]  ;;  %v361_v56 = vld [vmem:[%s1116_s5 + $0x18] sm:$0xff]  ;;  %v360_v61 = vld [vmem:[%s1116_s5 + $0x10] sm:$0xff] }
  0x18   :  { %577 = vmatpush3.msra.mxu0 %v32_v21  ;;  %608 = vmatpush3.msra.mxu1 %v913_v22  ;;  %v362_v55 = vld [vmem:[%s1116_s5 + $0x20] sm:$0xff]  ;;  %v359_v62 = vld [vmem:[%s1116_s5 + $0x8] sm:$0xff] }
  0x19   :  { %578 = vmatprep.subr.mxu0 %v754_v1  ;;  %609 = vmatprep.subr.mxu1 %v754_v1  ;;  %v358_v63 = vld [vmem:[%s1116_s5] sm:$0xff] }
  0x1a   :  { %579 = vmatpush3.msra.mxu0 %v31_v23  ;;  %610 = vmatpush3.msra.mxu1 %v924_v24 }
  0x1b   :  { %580 = vmatprep.subr.mxu0 %v754_v1  ;;  %611 = vmatprep.subr.mxu1 %v754_v1 }
  0x1c   :  { %581 = vmatpush3.msra.mxu0 %v30_v25  ;;  %612 = vmatpush3.msra.mxu1 %v935_v26 }
  0x1d   :  { %582 = vmatprep.subr.mxu0 %v754_v1  ;;  %613 = vmatprep.subr.mxu1 %v754_v1 }
  0x1e   :  { %583 = vmatpush3.msra.mxu0 %v29_v27  ;;  %614 = vmatpush3.msra.mxu1 %v946_v28 }
  0x1f   :  { %584 = vmatprep.subr.mxu0 %v754_v1  ;;  %615 = vmatprep.subr.mxu1 %v754_v1 }
  0x20   :  { %585 = vmatpush3.msra.mxu0 %v28_v29  ;;  %616 = vmatpush3.msra.mxu1 %v124_v31 }
  0x21   :  { %587 = vmatmul.mubr.f32.vlgmr.msra.gmra.mxu0 %v27_v30  ;;  %624 = vmatprep.subr.mxu0 %v754_v1 }
  0x22   :  { %625 = vmatpush3.msra.mxu0 %v820_v5  ;;  %656 = vmatprep.mubr.msk.f32.mxu0 %vm755_vm0, %v754_v1 }
  0x23   :  { %626 = vmatprep.subr.mxu0 %v754_v1  ;;  %617 = vmatprep.subr.mxu1 %v754_v1 }
  0x24   :  { %627 = vmatpush3.msra.mxu0 %v826_v6  ;;  %618 = vmatpush3.msra.mxu1 %v123_v32 }
  0x25   :  { %628 = vmatprep.subr.mxu0 %v754_v1  ;;  %619 = vmatprep.subr.mxu1 %v754_v1 }
  0x26   :  { %629 = vmatpush3.msra.mxu0 %v836_v8  ;;  %620 = vmatpush3.msra.mxu1 %v122_v33 }
  0x27   :  { %630 = vmatprep.subr.mxu0 %v754_v1  ;;  %659 = vmatprep.subr.mxu1 %v754_v1 }
  0x28   :  { %631 = vmatpush3.msra.mxu0 %v847_v10 }
  0x29   :  { %632 = vmatprep.subr.mxu0 %v754_v1 }
  0x2a   :  { %633 = vmatpush3.msra.mxu0 %v858_v12 }
  0x2b   :  { %634 = vmatprep.subr.mxu0 %v754_v1 }
  0x2c   :  { %635 = vmatpush3.msra.mxu0 %v869_v14 }
  0x2d   :  { %636 = vmatprep.subr.mxu0 %v754_v1 }
  0x2e   :  { %637 = vmatpush3.msra.mxu0 %v880_v16 }
  0x2f   :  { %638 = vmatprep.subr.mxu0 %v754_v1 }
  0x30   :  { %639 = vmatpush3.msra.mxu0 %v891_v18 }
  0x31   :  { %640 = vmatprep.subr.mxu0 %v754_v1 }
  0x32   :  { %641 = vmatpush3.msra.mxu0 %v902_v20 }
  0x33   :  { %642 = vmatprep.subr.mxu0 %v754_v1 }
  0x34   :  { %643 = vmatpush3.msra.mxu0 %v913_v22 }
  0x35   :  { %644 = vmatprep.subr.mxu0 %v754_v1 }
  0x36   :  { %645 = vmatpush3.msra.mxu0 %v924_v24 }
  0x37   :  { %646 = vmatprep.subr.mxu0 %v754_v1 }
  0x38   :  { %647 = vmatpush3.msra.mxu0 %v935_v26 }
  0x39   :  { %648 = vmatprep.subr.mxu0 %v754_v1 }
  0x3a   :  { %649 = vmatpush3.msra.mxu0 %v946_v28 }
  0x3b   :  { %650 = vmatprep.subr.mxu0 %v754_v1 }
  0x3c   :  { %651 = vmatpush3.msra.mxu0 %v124_v31 }
  0x3d   :  { %652 = vmatprep.subr.mxu0 %v754_v1 }
  0x3e   :  { %653 = vmatpush3.msra.mxu0 %v123_v32 }
  0x3f   :  { %654 = vmatprep.subr.mxu0 %v754_v1 }
  0x40   :  { %655 = vmatpush3.msra.mxu0 %v122_v33 }
  0x41   :  { %694 = vmatprep.subr.mxu0 %v754_v1 }
  0xe1   :  { %v117_v35 = vpop.f32.mrf.mxu0 }
  0xe2   :  { %v118_v36 = vadd.f32 %v466_v34, %v117_v35 }
  0xe3   :  { %v588_v37 = vpop.f32.mrf.mxu0 }
  0xe4   :  { %v121_v38 = vmax.f32 %v118_v36, 0.0 }
  0xe6   :  { %622 = vmatmul.mubr.f32.vlgmr.msra.gmra.mxu1 %v121_v38 }
  0xe7   :  { %660 = vmatpush3.msra.mxu1 %v820_v5  ;;  %691 = vmatprep.mubr.msk.f32.mxu1 %vm755_vm0, %v754_v1  ;;  %v468_v5 = vld [vmem:[%s1117_s6] ss:$0 sm:$0xff] }
  0xe8   :  { %661 = vmatprep.subr.mxu1 %v754_v1 }
  0xe9   :  { %662 = vmatpush3.msra.mxu1 %v826_v6 }
  0xea   :  { %663 = vmatprep.subr.mxu1 %v754_v1 }
  0xeb   :  { %664 = vmatpush3.msra.mxu1 %v836_v8 }
  0xec   :  { %665 = vmatprep.subr.mxu1 %v754_v1 }
  0xed   :  { %666 = vmatpush3.msra.mxu1 %v847_v10 }
  0xee   :  { %667 = vmatprep.subr.mxu1 %v754_v1 }
  0xef   :  { %668 = vmatpush3.msra.mxu1 %v858_v12 }
  0xf0   :  { %669 = vmatprep.subr.mxu1 %v754_v1 }
  0xf1   :  { %670 = vmatpush3.msra.mxu1 %v869_v14 }
  0xf2   :  { %671 = vmatprep.subr.mxu1 %v754_v1 }
  0xf3   :  { %672 = vmatpush3.msra.mxu1 %v880_v16 }
  0xf4   :  { %673 = vmatprep.subr.mxu1 %v754_v1 }
  0xf5   :  { %674 = vmatpush3.msra.mxu1 %v891_v18 }
  0xf6   :  { %675 = vmatprep.subr.mxu1 %v754_v1 }
  0xf7   :  { %676 = vmatpush3.msra.mxu1 %v902_v20 }
  0xf8   :  { %677 = vmatprep.subr.mxu1 %v754_v1 }
  0xf9   :  { %678 = vmatpush3.msra.mxu1 %v913_v22 }
  0xfa   :  { %679 = vmatprep.subr.mxu1 %v754_v1 }
  0xfb   :  { %680 = vmatpush3.msra.mxu1 %v924_v24 }
  0xfc   :  { %681 = vmatprep.subr.mxu1 %v754_v1 }
  0xfd   :  { %682 = vmatpush3.msra.mxu1 %v935_v26 }
  0xfe   :  { %683 = vmatprep.subr.mxu1 %v754_v1 }
  0xff   :  { %684 = vmatpush3.msra.mxu1 %v946_v28 }
 0x100   :  { %685 = vmatprep.subr.mxu1 %v754_v1 }
 0x101   :  { %686 = vmatpush3.msra.mxu1 %v124_v31 }
 0x102   :  { %687 = vmatprep.subr.mxu1 %v754_v1 }
 0x103   :  { %688 = vmatpush3.msra.mxu1 %v123_v32 }
 0x104   :  { %689 = vmatprep.subr.mxu1 %v754_v1 }
 0x105   :  { %690 = vmatpush3.msra.mxu1 %v122_v33 }
 0x1a6   :  { %v211_v40 = vpop.f32.mrf.mxu1 }
 0x1a7   :  { %v212_v41 = vadd.f32 %v467_v39, %v211_v40 }
 0x1a8   :  { %v623_v42 = vpop.f32.mrf.mxu1 }
 0x1a9   :  { %v215_v43 = vmax.f32 %v212_v41, 0.0 }
 0x1ab   :  { %657 = vmatmul.mubr.f32.vlgmr.msra.gmra.mxu0 %v215_v43 }
 0x1ac   :  { %726 = vmatprep.mubr.msk.f32.mxu0 %vm755_vm0, %v754_v1  ;;  %695 = vmatpush3.msra.mxu0 %v373_v44 }
 0x1ad   :  { %696 = vmatprep.subr.mxu0 %v754_v1 }
 0x1ae   :  { %697 = vmatpush3.msra.mxu0 %v372_v45 }
 0x1af   :  { %698 = vmatprep.subr.mxu0 %v754_v1 }
 0x1b0   :  { %699 = vmatpush3.msra.mxu0 %v371_v46 }
 0x1b1   :  { %700 = vmatprep.subr.mxu0 %v754_v1 }
 0x1b2   :  { %701 = vmatpush3.msra.mxu0 %v370_v47 }
 0x1b3   :  { %702 = vmatprep.subr.mxu0 %v754_v1 }
 0x1b4   :  { %703 = vmatpush3.msra.mxu0 %v369_v48 }
 0x1b5   :  { %704 = vmatprep.subr.mxu0 %v754_v1 }
 0x1b6   :  { %705 = vmatpush3.msra.mxu0 %v368_v49 }
 0x1b7   :  { %706 = vmatprep.subr.mxu0 %v754_v1 }
 0x1b8   :  { %707 = vmatpush3.msra.mxu0 %v367_v50 }
 0x1b9   :  { %708 = vmatprep.subr.mxu0 %v754_v1 }
 0x1ba   :  { %709 = vmatpush3.msra.mxu0 %v366_v51 }
 0x1bb   :  { %710 = vmatprep.subr.mxu0 %v754_v1 }
 0x1bc   :  { %711 = vmatpush3.msra.mxu0 %v365_v52 }
 0x1bd   :  { %712 = vmatprep.subr.mxu0 %v754_v1 }
 0x1be   :  { %713 = vmatpush3.msra.mxu0 %v364_v53 }
 0x1bf   :  { %714 = vmatprep.subr.mxu0 %v754_v1 }
 0x1c0   :  { %715 = vmatpush3.msra.mxu0 %v363_v54 }
 0x1c1   :  { %716 = vmatprep.subr.mxu0 %v754_v1 }
 0x1c2   :  { %717 = vmatpush3.msra.mxu0 %v362_v55 }
 0x1c3   :  { %718 = vmatprep.subr.mxu0 %v754_v1 }
 0x1c4   :  { %719 = vmatpush3.msra.mxu0 %v361_v56 }
 0x1c5   :  { %720 = vmatprep.subr.mxu0 %v754_v1 }
 0x1c6   :  { %721 = vmatpush3.msra.mxu0 %v360_v61 }
 0x1c7   :  { %722 = vmatprep.subr.mxu0 %v754_v1 }
 0x1c8   :  { %723 = vmatpush3.msra.mxu0 %v359_v62 }
 0x1c9   :  { %724 = vmatprep.subr.mxu0 %v754_v1 }
 0x1ca   :  { %725 = vmatpush3.msra.mxu0 %v358_v63 }
 0x26b   :  { %v282_v57 = vpop.f32.mrf.mxu0 }
 0x26c   :  { %v283_v58 = vadd.f32 %v467_v39, %v282_v57 }
 0x26d   :  { %v658_v59 = vpop.f32.mrf.mxu0 }
 0x26e   :  { %v286_v60 = vmax.f32 %v283_v58, 0.0 }
 0x270   :  { %692 = vmatmul.mubr.f32.vlgmr.msra.gmra.mxu1 %v286_v60 }
 0x330   :  { %v353_v0 = vpop.f32.mrf.mxu1 }
 0x331   :  { %v354_v2 = vadd.f32 %v467_v39, %v353_v0 }
 0x332   :  { %v693_v3 = vpop.f32.mrf.mxu1 }
 0x333   :  { %v357_v4 = vmax.f32 %v354_v2, 0.0 }
 0x335   :  { %727 = vmatmul.mubr.f32.vlgmr.msra.gmra.mxu0 %v357_v4 }
 0x3f5   :  { %v447_v6 = vpop.f32.mrf.mxu0 }
 0x3f6   :  { %v448_v7 = vadd.f32 %v468_v5, %v447_v6 }
 0x3f7   :  { %v728_v1 = vpop.f32.mrf.mxu0 }
 0x3f8   :  { %451 = vst [vmem:[#allocation2] sm:$0xff] %v448_v7 }
 0x3f9   :  { %743 = shalt.err (!%p740_p4)
}
 0x3fa   :  { %461 = dma.vmem_to_hbm [thread:$0]  %s459_s27, 128, %s1118_s7, [#allocation3]  }
 0x3fb   :  { %752 = dma.done.wait [#allocation3], 128  }
 0x3fc   :  { %753 = vsyncadd [#allocation3], 4294967168 }
 0x3fd   :  { %465 = vsyncpa [#allocation3], 1 }

</bundles_post_ra>
